<compile_context>
chip_gen: v7x
topology: tpu7x:2x2x1
jax: 0.10.0
libtpu: 0.0.40
codegen_flags: <defaults>
</compile_context>

<pallas_src>
import jax
import jax.numpy as jnp
from jax.experimental import pallas as pl
from jax.experimental.pallas import tpu as pltpu

LANE = 128
BN_EPS = 1e-5


def _round_up(x: int, m: int) -> int:
    return (x + m - 1) // m * m


# ----------------------------------------------------------------------------
# Pallas kernel
# ----------------------------------------------------------------------------
def _make_kernel(p: int):
    """p = lane-padded feature width (multiple of 128)."""

    def kernel(x_ref, w1_ref, b1_ref, s1_ref, t1_ref,
               w2_ref, b2_ref, s2_ref, t2_ref, out_ref):
        # Fused block-diagonal first layer: [cs_x | ge_x] @ W1 -> [cs | ge]
        h = jnp.dot(x_ref[...], w1_ref[...],
                    preferred_element_type=jnp.float32)        # (tb, 2p) f32
        h = h + b1_ref[...]
        cs = h[:, :p]
        ge = h[:, p:]

        # BatchNorm1d (eval) folded to scale/shift, in f32 on the VPU.
        psi = (cs * ge) * s1_ref[...] + t1_ref[...]

        # psi Linear -> BatchNorm1d -> Sigmoid
        psi = jnp.dot(psi.astype(w2_ref.dtype), w2_ref[...],
                      preferred_element_type=jnp.float32) + b2_ref[...]
        psi = psi * s2_ref[...] + t2_ref[...]
        out_ref[...] = jax.nn.sigmoid(psi)

    return kernel


# ----------------------------------------------------------------------------
# Wrapper
# ----------------------------------------------------------------------------
def ge_attention_forward(cs_x, ge_x, params, *, tile_b=256, use_bf16=True,
                         eps=BN_EPS):
    """params:
       'cs_w'  : (W[cs_in,cs_in], b[cs_in])       (W stored (in, out))
       'ge_w'  : (W[ge_in,cs_in], b[cs_in])
       'psi_w' : (W[cs_in,cs_in], b[cs_in])
       'bn'    : (gamma, beta, running_mean, running_var)   # over cs*ge
       'psi_bn': (gamma, beta, running_mean, running_var)   # inside psi Seq.
    """
    w_cs, b_cs = params["cs_w"]
    w_ge, b_ge = params["ge_w"]
    w_psi, b_psi = params["psi_w"]

    cs_in = w_cs.shape[0]
    ge_in = w_ge.shape[0]
    batch = cs_x.shape[0]

    p = _round_up(cs_in, LANE)          # lane-dense feature width
    k = cs_in + ge_in                   # fused contraction dim
    mm_dtype = jnp.bfloat16 if use_bf16 else jnp.float32

    # --- block-diagonal fused first layer ------------------------------------
    w1 = jnp.zeros((k, 2 * p), jnp.float32)
    w1 = w1.at[:cs_in, :cs_in].set(w_cs.astype(jnp.float32))
    w1 = w1.at[cs_in:, p:p + cs_in].set(w_ge.astype(jnp.float32))
    b1 = jnp.zeros((1, 2 * p), jnp.float32)
    b1 = b1.at[0, :cs_in].set(b_cs)
    b1 = b1.at[0, p:p + cs_in].set(b_ge)

    # --- eval-mode BatchNorm folded to scale/shift, zero-padded lanes --------
    def bn_fold(gamma, beta, mean, var):
        scale = gamma / jnp.sqrt(var + eps)
        shift = beta - mean * scale
        s = jnp.zeros((1, p), jnp.float32).at[0, :cs_in].set(scale)
        t = jnp.zeros((1, p), jnp.float32).at[0, :cs_in].set(shift)
        return s, t

    s1, t1 = bn_fold(*params["bn"])
    s2, t2 = bn_fold(*params["psi_bn"])

    # --- psi Linear, lane-padded ---------------------------------------------
    w2 = jnp.zeros((p, p), jnp.float32).at[:cs_in, :cs_in].set(
        w_psi.astype(jnp.float32))
    b2 = jnp.zeros((1, p), jnp.float32).at[0, :cs_in].set(b_psi)

    # --- batch tiling ---------------------------------------------------------
    x_cat = jnp.concatenate([cs_x.astype(jnp.float32),
                             ge_x.astype(jnp.float32)], axis=1)
    tile_b = min(tile_b, _round_up(batch, 8))
    padded_b = _round_up(batch, tile_b)
    if padded_b != batch:
        x_cat = jnp.pad(x_cat, ((0, padded_b - batch), (0, 0)))

    x_cat = x_cat.astype(mm_dtype)
    w1 = w1.astype(mm_dtype)
    w2 = w2.astype(mm_dtype)

    grid = (padded_b // tile_b,)
    kernel = _make_kernel(p)

    itemsize = 2 if use_bf16 else 4
    flops = 2 * padded_b * (k * 2 * p + p * p) + 10 * padded_b * p
    bytes_accessed = (padded_b * k * itemsize                     # x
                      + (k * 2 * p + p * p) * itemsize            # W1, W2
                      + (2 * p + 6 * p) * 4                       # biases / BN
                      + padded_b * p * 4)                         # output
    cost = pl.CostEstimate(flops=int(flops), transcendentals=int(padded_b * p),
                           bytes_accessed=int(bytes_accessed))

    const2 = lambda i: (0, 0)   # weights/biases: same block every grid step

    out = pl.pallas_call(
        kernel,
        out_shape=jax.ShapeDtypeStruct((padded_b, p), jnp.float32),
        grid=grid,
        in_specs=[
            pl.BlockSpec((tile_b, k), lambda i: (i, 0)),   # x (batch-tiled)
            pl.BlockSpec((k, 2 * p), const2),              # W1
            pl.BlockSpec((1, 2 * p), const2),              # b1
            pl.BlockSpec((1, p), const2),                  # bn1 scale
            pl.BlockSpec((1, p), const2),                  # bn1 shift
            pl.BlockSpec((p, p), const2),                  # W2
            pl.BlockSpec((1, p), const2),                  # b2
            pl.BlockSpec((1, p), const2),                  # bn2 scale
            pl.BlockSpec((1, p), const2),                  # bn2 shift
        ],
        out_specs=pl.BlockSpec((tile_b, p), lambda i: (i, 0)),
        compiler_params=pltpu.CompilerParams(
            dimension_semantics=("parallel",)),
        cost_estimate=cost,
    )(x_cat, w1, b1, s1, t1, w2, b2, s2, t2)

    return out[:batch, :cs_in]


# ----------------------------------------------------------------------------
# Pure-JAX reference (faithful to the PyTorch eval forward, f32)
# ----------------------------------------------------------------------------
def reference_forward(cs_x, ge_x, params, eps=BN_EPS):
    w_cs, b_cs = params["cs_w"]
    w_ge, b_ge = params["ge_w"]
    w_psi, b_psi = params["psi_w"]

    def bn(x, gamma, beta, mean, var):
        return (x - mean) / jnp.sqrt(var + eps) * gamma + beta

    hi = jax.lax.Precision.HIGHEST
    cs = jnp.dot(cs_x, w_cs, precision=hi) + b_cs
    ge = jnp.dot(ge_x, w_ge, precision=hi) + b_ge
    psi = bn(cs * ge, *params["bn"])
    psi = jnp.dot(psi, w_psi, precision=hi) + b_psi
    psi = bn(psi, *params["psi_bn"])
    return jax.nn.sigmoid(psi)


# ----------------------------------------------------------------------------
# Deterministic parameter init (PyTorch-like)
# ----------------------------------------------------------------------------
def init_params(key, ge_in, cs_in):
    def linear(key, d_in, d_out):
        kw, kb = jax.random.split(key)
        bound = 1.0 / jnp.sqrt(d_in)
        w = jax.random.uniform(kw, (d_in, d_out), jnp.float32, -bound, bound)
        b = jax.random.uniform(kb, (d_out,), jnp.float32, -bound, bound)
        return w, b

    def bn_stats(key, d):
        k1, k2, k3, k4 = jax.random.split(key, 4)
        gamma = jax.random.uniform(k1, (d,), jnp.float32, 0.5, 1.5)
        beta = 0.1 * jax.random.normal(k2, (d,), jnp.float32)
        mean = 0.5 * jax.random.normal(k3, (d,), jnp.float32)
        var = jax.random.uniform(k4, (d,), jnp.float32, 0.5, 1.5)
        return gamma, beta, mean, var

    k1, k2, k3, k4, k5 = jax.random.split(key, 5)
    return {
        "cs_w": linear(k1, cs_in, cs_in),
        "ge_w": linear(k2, ge_in, cs_in),
        "psi_w": linear(k3, cs_in, cs_in),
        "bn": bn_stats(k4, cs_in),
        "psi_bn": bn_stats(k5, cs_in),
    }


# ----------------------------------------------------------------------------
if __name__ == "__main__":
    batch = 8
    ge_in, cs_in = 32, 24

    key = jax.random.PRNGKey(0)
    k_params, k_ge, k_cs = jax.random.split(key, 3)

    params = init_params(k_params, ge_in, cs_in)
    ge_x = jax.random.normal(k_ge, (batch, ge_in), jnp.float32)
    cs_x = jax.random.normal(k_cs, (batch, cs_in), jnp.float32)

    ref = reference_forward(cs_x, ge_x, params)

    # f32 kernel path: tight check against the f32 reference.
    out_f32 = jax.block_until_ready(
        ge_attention_forward(cs_x, ge_x, params, use_bf16=False))
    assert out_f32.shape == (batch, cs_in)
    assert jnp.allclose(out_f32, ref, atol=1e-4, rtol=1e-4), \
        "f32 kernel mismatch vs reference"

    # bf16-MXU path (default / fast path on v6e+v7x): looser tolerance.
    out_bf16 = jax.block_until_ready(
        ge_attention_forward(cs_x, ge_x, params, use_bf16=True))
    assert out_bf16.shape == (batch, cs_in)
    assert jnp.allclose(out_bf16, ref, atol=2e-2, rtol=2e-2), \
        "bf16 kernel mismatch vs reference"

    print("KERNEL_OK")
</pallas_src>

<mosaic_0001>
module attributes {stable_mosaic.version = 11 : i64} {
  func.func @kernel(%arg0: i32, %arg1: memref<8x56xf32, #tpu.memory_space<vmem>>, %arg2: memref<56x256xf32, #tpu.memory_space<vmem>>, %arg3: memref<1x256xf32, #tpu.memory_space<vmem>>, %arg4: memref<1x128xf32, #tpu.memory_space<vmem>>, %arg5: memref<1x128xf32, #tpu.memory_space<vmem>>, %arg6: memref<128x128xf32, #tpu.memory_space<vmem>>, %arg7: memref<1x128xf32, #tpu.memory_space<vmem>>, %arg8: memref<1x128xf32, #tpu.memory_space<vmem>>, %arg9: memref<1x128xf32, #tpu.memory_space<vmem>>, %arg10: memref<8x128xf32, #tpu.memory_space<vmem>>) attributes {dimension_semantics = [#tpu.dimension_semantics<parallel>], iteration_bounds = array<i64: 1>, scalar_prefetch = 0 : i64, scratch_operands = 0 : i64, tpu.core_type = #tpu.core_type<tc>, window_params = [{transform_indices = @transform_0, window_bounds = array<i64: 8, 56>}, {pipeline_mode = #tpu.pipeline_mode<synchronous>, transform_indices = @transform_1, window_bounds = array<i64: 56, 256>}, {pipeline_mode = #tpu.pipeline_mode<synchronous>, transform_indices = @transform_2, window_bounds = array<i64: 1, 256>}, {pipeline_mode = #tpu.pipeline_mode<synchronous>, transform_indices = @transform_3, window_bounds = array<i64: 1, 128>}, {pipeline_mode = #tpu.pipeline_mode<synchronous>, transform_indices = @transform_4, window_bounds = array<i64: 1, 128>}, {pipeline_mode = #tpu.pipeline_mode<synchronous>, transform_indices = @transform_5, window_bounds = array<i64: 128, 128>}, {pipeline_mode = #tpu.pipeline_mode<synchronous>, transform_indices = @transform_6, window_bounds = array<i64: 1, 128>}, {pipeline_mode = #tpu.pipeline_mode<synchronous>, transform_indices = @transform_7, window_bounds = array<i64: 1, 128>}, {pipeline_mode = #tpu.pipeline_mode<synchronous>, transform_indices = @transform_8, window_bounds = array<i64: 1, 128>}, {transform_indices = @transform_9, window_bounds = array<i64: 8, 128>}]} {
    %c0 = arith.constant 0 : index
    %c0_0 = arith.constant 0 : index
    %0 = vector.load %arg1[%c0, %c0_0] : memref<8x56xf32, #tpu.memory_space<vmem>>, vector<8x56xf32>
    %c0_1 = arith.constant 0 : index
    %c0_2 = arith.constant 0 : index
    %1 = vector.load %arg2[%c0_1, %c0_2] : memref<56x256xf32, #tpu.memory_space<vmem>>, vector<56x256xf32>
    %cst = arith.constant dense<0.000000e+00> : vector<8x256xf32>
    %2 = tpu.matmul %0, %1, %cst {dimension_numbers = #tpu.dot_dimension_numbers<[1], [0], [0], [1], [0, 0, 1, 1], [], []>} : vector<8x56xf32>, vector<56x256xf32>, vector<8x256xf32> -> vector<8x256xf32>
    %c0_3 = arith.constant 0 : index
    %c0_4 = arith.constant 0 : index
    %3 = vector.load %arg3[%c0_3, %c0_4] : memref<1x256xf32, #tpu.memory_space<vmem>>, vector<1x256xf32>
    %4 = vector.broadcast %3 : vector<1x256xf32> to vector<8x256xf32>
    %5 = arith.addf %2, %4 : vector<8x256xf32>
    %6 = vector.extract_strided_slice %5 {offsets = [0, 0], sizes = [8, 128], strides = [1, 1]} : vector<8x256xf32> to vector<8x128xf32>
    %7 = vector.extract_strided_slice %5 {offsets = [0, 128], sizes = [8, 128], strides = [1, 1]} : vector<8x256xf32> to vector<8x128xf32>
    %8 = arith.mulf %6, %7 : vector<8x128xf32>
    %c0_5 = arith.constant 0 : index
    %c0_6 = arith.constant 0 : index
    %9 = vector.load %arg4[%c0_5, %c0_6] : memref<1x128xf32, #tpu.memory_space<vmem>>, vector<1x128xf32>
    %10 = vector.broadcast %9 : vector<1x128xf32> to vector<8x128xf32>
    %11 = arith.mulf %8, %10 : vector<8x128xf32>
    %c0_7 = arith.constant 0 : index
    %c0_8 = arith.constant 0 : index
    %12 = vector.load %arg5[%c0_7, %c0_8] : memref<1x128xf32, #tpu.memory_space<vmem>>, vector<1x128xf32>
    %13 = vector.broadcast %12 : vector<1x128xf32> to vector<8x128xf32>
    %14 = arith.addf %11, %13 : vector<8x128xf32>
    %c0_9 = arith.constant 0 : index
    %c0_10 = arith.constant 0 : index
    %15 = vector.load %arg6[%c0_9, %c0_10] : memref<128x128xf32, #tpu.memory_space<vmem>>, vector<128x128xf32>
    %cst_11 = arith.constant dense<0.000000e+00> : vector<8x128xf32>
    %16 = tpu.matmul %14, %15, %cst_11 {dimension_numbers = #tpu.dot_dimension_numbers<[1], [0], [0], [1], [0, 0, 1, 1], [], []>} : vector<8x128xf32>, vector<128x128xf32>, vector<8x128xf32> -> vector<8x128xf32>
    %c0_12 = arith.constant 0 : index
    %c0_13 = arith.constant 0 : index
    %17 = vector.load %arg7[%c0_12, %c0_13] : memref<1x128xf32, #tpu.memory_space<vmem>>, vector<1x128xf32>
    %18 = vector.broadcast %17 : vector<1x128xf32> to vector<8x128xf32>
    %19 = arith.addf %16, %18 : vector<8x128xf32>
    %c0_14 = arith.constant 0 : index
    %c0_15 = arith.constant 0 : index
    %20 = vector.load %arg8[%c0_14, %c0_15] : memref<1x128xf32, #tpu.memory_space<vmem>>, vector<1x128xf32>
    %21 = vector.broadcast %20 : vector<1x128xf32> to vector<8x128xf32>
    %22 = arith.mulf %19, %21 : vector<8x128xf32>
    %c0_16 = arith.constant 0 : index
    %c0_17 = arith.constant 0 : index
    %23 = vector.load %arg9[%c0_16, %c0_17] : memref<1x128xf32, #tpu.memory_space<vmem>>, vector<1x128xf32>
    %24 = vector.broadcast %23 : vector<1x128xf32> to vector<8x128xf32>
    %25 = arith.addf %22, %24 : vector<8x128xf32>
    %26 = arith.negf %25 : vector<8x128xf32>
    %27 = math.exp %26 : vector<8x128xf32>
    %cst_18 = arith.constant 1.000000e+00 : f32
    %28 = vector.broadcast %cst_18 : f32 to vector<8x128xf32>
    %29 = arith.addf %28, %27 : vector<8x128xf32>
    %30 = arith.divf %28, %29 : vector<8x128xf32>
    %c0_19 = arith.constant 0 : index
    %c0_20 = arith.constant 0 : index
    %31 = vector.load %arg10[%c0_19, %c0_20] : memref<8x128xf32, #tpu.memory_space<vmem>>, vector<8x128xf32>
    tpu.vector_store %arg10[%c0_19, %c0_20], %30 {strides = array<i32>} : memref<8x128xf32, #tpu.memory_space<vmem>>, vector<8x128xf32>,
    return
  }
  func.func @transform_0(%arg0: i32) -> (i32, i32) {
    %c0_i32 = arith.constant 0 : i32
    %c0_i32_0 = arith.constant 0 : i32
    return %arg0, %c0_i32 : i32, i32
  }
  func.func @transform_1(%arg0: i32) -> (i32, i32) {
    %c0_i32 = arith.constant 0 : i32
    %c0_i32_0 = arith.constant 0 : i32
    %c0_i32_1 = arith.constant 0 : i32
    return %c0_i32, %c0_i32_0 : i32, i32
  }
  func.func @transform_2(%arg0: i32) -> (i32, i32) {
    %c0_i32 = arith.constant 0 : i32
    %c0_i32_0 = arith.constant 0 : i32
    %c0_i32_1 = arith.constant 0 : i32
    return %c0_i32, %c0_i32_0 : i32, i32
  }
  func.func @transform_3(%arg0: i32) -> (i32, i32) {
    %c0_i32 = arith.constant 0 : i32
    %c0_i32_0 = arith.constant 0 : i32
    %c0_i32_1 = arith.constant 0 : i32
    return %c0_i32, %c0_i32_0 : i32, i32
  }
  func.func @transform_4(%arg0: i32) -> (i32, i32) {
    %c0_i32 = arith.constant 0 : i32
    %c0_i32_0 = arith.constant 0 : i32
    %c0_i32_1 = arith.constant 0 : i32
    return %c0_i32, %c0_i32_0 : i32, i32
  }
  func.func @transform_5(%arg0: i32) -> (i32, i32) {
    %c0_i32 = arith.constant 0 : i32
    %c0_i32_0 = arith.constant 0 : i32
    %c0_i32_1 = arith.constant 0 : i32
    return %c0_i32, %c0_i32_0 : i32, i32
  }
  func.func @transform_6(%arg0: i32) -> (i32, i32) {
    %c0_i32 = arith.constant 0 : i32
    %c0_i32_0 = arith.constant 0 : i32
    %c0_i32_1 = arith.constant 0 : i32
    return %c0_i32, %c0_i32_0 : i32, i32
  }
  func.func @transform_7(%arg0: i32) -> (i32, i32) {
    %c0_i32 = arith.constant 0 : i32
    %c0_i32_0 = arith.constant 0 : i32
    %c0_i32_1 = arith.constant 0 : i32
    return %c0_i32, %c0_i32_0 : i32, i32
  }
  func.func @transform_8(%arg0: i32) -> (i32, i32) {
    %c0_i32 = arith.constant 0 : i32
    %c0_i32_0 = arith.constant 0 : i32
    %c0_i32_1 = arith.constant 0 : i32
    return %c0_i32, %c0_i32_0 : i32, i32
  }
  func.func @transform_9(%arg0: i32) -> (i32, i32) {
    %c0_i32 = arith.constant 0 : i32
    %c0_i32_0 = arith.constant 0 : i32
    return %arg0, %c0_i32 : i32, i32
  }
}

</mosaic_0001>

<bundles_post_ra>
// kernel: tpu_custom_call.1
= control target key start
LH: loop header
LB: loop body
LE: loop exit
PB: predicated region body
PF: predicated region fallthrough
CT: control target
= control target key end

     0   :  { %14 = vsyncpa [#allocation3], 0  ;;  %s664_s0 = inlined_call_operand.hbm [shape: f32[8,56], index: 0, kind: input, shape index: {}]   ;;  %s665_s1 = inlined_call_operand.hbm [shape: f32[56,256], index: 1, kind: input, shape index: {}]   ;;  %s666_s2 = inlined_call_operand.vmem [shape: f32[1,256], index: 2, kind: input, shape index: {}]   ;;  %s667_s3 = inlined_call_operand.vmem [shape: f32[1,128], index: 3, kind: input, shape index: {}]   ;;  %s668_s4 = inlined_call_operand.vmem [shape: f32[1,128], index: 4, kind: input, shape index: {}]   ;;  %s669_s5 = inlined_call_operand.hbm [shape: f32[128,128], index: 5, kind: input, shape index: {}]   ;;  %s670_s6 = inlined_call_operand.vmem [shape: f32[1,128], index: 6, kind: input, shape index: {}]   ;;  %s671_s7 = inlined_call_operand.vmem [shape: f32[1,128], index: 7, kind: input, shape index: {}]   ;;  %s672_s8 = inlined_call_operand.vmem [shape: f32[1,128], index: 8, kind: input, shape index: {}]   ;;  %s673_s9 = inlined_call_operand.hbm [shape: f32[8,128], index: 9, kind: output, shape index: {}]  }
   0x1   :  { %15 = vsyncpa [#allocation6], 0 }
   0x2   :  { %16 = vsyncpa [#allocation4], 0  ;;  %s527_s30 = smov [#allocation5]   ;;  %s433_s13 = scalar_lea.hbm %s665_s1, 1792 }
   0x3   :  { %s32_s10 = sshll.u32 %s527_s30, 4  ;;  %p434_p0 = scmp.ne.s32.totalorder %s665_s1, %s433_s13  ;;  %s33_s10 = int_to_ptr.vmem [resolvable:$true] %s32_s10 }
   0x4   :  { %p437_p1 = scmp.lt.u32.totalorder %s433_s13, %s665_s1 }
   0x6   :  { %p439_p2 = pnand %p437_p1, %p434_p0 }
   0x8   :  { %442 = shalt.err (!%p439_p2)
}
   0x9   :  { %s443_s18 = scalar_lea.vmem %s33_s10, 1792  ;;  %p448_p4 = scmp.lt.s32.totalorder %s33_s10, %s33_s10 }
   0xa   :  { %p444_p3 = scmp.ne.s32.totalorder %s33_s10, %s443_s18  ;;  %p449_p5 = scmp.lt.s32.totalorder %s443_s18, %s443_s18 }
   0xc   :  { %p450_p6 = por %p449_p5, %p448_p4 }
   0xe   :  { %p451_p7 = pnand %p450_p6, %p444_p3 }
  0x10   :  { %454 = shalt.err (!%p451_p7)
}
  0x11   :  { %s528_s19 = smov 256   ;;  %s529_s20 = smov 16  }
  0x12   :  { %38 = dma.hbm_to_vmem [thread:$0]  %s665_s1, 1792, %s33_s10, [#allocation6], %s528_s19, %s528_s19, %s529_s20  }
  0x13   :  { %s530_s23 = smov [#allocation2]   ;;  %s531_s25 = smov [#allocation7]  }
  0x14   :  { %s23_s24 = sshll.u32 %s530_s23, 4  ;;  %s50_s26 = sshll.u32 %s531_s25, 4  ;;  %s24_s24 = int_to_ptr.vmem [resolvable:$true] %s23_s24  ;;  %s51_s26 = int_to_ptr.vmem [resolvable:$true] %s50_s26 }
  0x15   :  { %s455_s29 = scalar_lea.hbm %s664_s0, 128 }
  0x16   :  { %p456_p8 = scmp.ne.s32.totalorder %s664_s0, %s455_s29  ;;  %p459_p9 = scmp.lt.u32.totalorder %s455_s29, %s664_s0 }
  0x18   :  { %p461_p10 = pnand %p459_p9, %p456_p8 }
  0x1a   :  { %464 = shalt.err (!%p461_p10)
}
  0x1b   :  { %s465_s1 = scalar_lea.vmem %s24_s24, 128  ;;  %p470_p12 = scmp.lt.s32.totalorder %s24_s24, %s24_s24 }
  0x1c   :  { %p466_p11 = scmp.ne.s32.totalorder %s24_s24, %s465_s1  ;;  %p471_p13 = scmp.lt.s32.totalorder %s465_s1, %s465_s1 }
  0x1e   :  { %p472_p0 = por %p471_p13, %p470_p12 }
  0x20   :  { %p473_p1 = pnand %p472_p0, %p466_p11 }
  0x22   :  { %476 = shalt.err (!%p473_p1)
}
  0x23   :  { %26 = dma.hbm_to_vmem [thread:$0]  %s664_s0, 128, %s24_s24, [#allocation3]  }
  0x24   :  { %s477_s17 = scalar_lea.hbm %s669_s5, 2048 }
  0x25   :  { %p478_p2 = scmp.ne.s32.totalorder %s669_s5, %s477_s17  ;;  %p481_p3 = scmp.lt.u32.totalorder %s477_s17, %s669_s5 }
  0x27   :  { %p483_p4 = pnand %p481_p3, %p478_p2 }
  0x29   :  { %486 = shalt.err (!%p483_p4)
}
  0x2a   :  { %s487_s22 = scalar_lea.vmem %s51_s26, 2048  ;;  %p492_p6 = scmp.lt.s32.totalorder %s51_s26, %s51_s26 }
  0x2b   :  { %p488_p5 = scmp.ne.s32.totalorder %s51_s26, %s487_s22  ;;  %p493_p7 = scmp.lt.s32.totalorder %s487_s22, %s487_s22 }
  0x2d   :  { %p494_p8 = por %p493_p7, %p492_p6 }
  0x2f   :  { %p495_p9 = pnand %p494_p8, %p488_p5 }
  0x31   :  { %498 = shalt.err (!%p495_p9)
}
  0x32   :  { %s532_s0 = smov 128   ;;  %s533_s23 = smov 8  }
  0x33   :  { %56 = dma.hbm_to_vmem [thread:$0]  %s669_s5, 2048, %s51_s26, [#allocation6], %s532_s0, %s532_s0, %s533_s23  }
  0x34   :  { %521 = dma.done.wait [#allocation3], 128  }
  0x35   :  { %522 = vsyncadd [#allocation3], 4294967168 }
  0x36   :  { %523 = dma.done.wait [#allocation6], 3840  }
  0x37   :  { %524 = vsyncadd [#allocation6], 4294963456  ;;  %v534_v0 = vmov 0.0   ;;  %v535_v1 = vmov 0.0|0.0   ;;  %v74_v2 = vld [vmem:[#allocation5 + $0x8] sm:$0xff]  ;;  %v76_v3 = vld [vmem:[#allocation5 + $0x18] sm:$0xff]  ;;  %v89_v47 = vlaneseq }
  0x38   :  { %167 = vmatprep.mubr.f32.mxu0 %v534_v0  ;;  %394 = vmatprep.subr.bf16.mxu1 %v535_v1  ;;  %v73_v4 = vld [vmem:[#allocation5] sm:$0xff]  ;;  %v382_v5 = vpack.c.bf16 %v76_v3, %v74_v2  ;;  %v75_v6 = vld [vmem:[#allocation5 + $0x10] sm:$0xff]  ;;  %v78_v7 = vld [vmem:[#allocation5 + $0x28] sm:$0xff]  ;;  %vm99_vm0 = vcmask 457728   ;;  %vm536_vm1 = vmmov 0  }
  0x39   :  { %v80_v8 = vld [vmem:[#allocation5 + $0x38] sm:$0xff]  ;;  %v384_v9 = vpack.c.bf16 %v75_v6, %v73_v4  ;;  %v77_v11 = vld [vmem:[#allocation5 + $0x20] sm:$0xff]  ;;  %v79_v12 = vld [vmem:[#allocation5 + $0x30] sm:$0xff]  ;;  %379 = vmatprep.mubr.msk.f32.mxu1 %vm536_vm1, %v534_v0  ;;  %v90_v48 = vshrl.u32 %v89_v47, 7 }
  0x3a   :  { %v386_v10 = vpack.c.bf16 %v80_v8, %v78_v7  ;;  %v82_v13 = vld [vmem:[#allocation5 + $0x48] sm:$0xff]  ;;  %383 = vmatprep.subr.bf16.mxu0 %v382_v5  ;;  %v84_v14 = vld [vmem:[#allocation5 + $0x58] sm:$0xff]  ;;  %v388_v15 = vpack.c.bf16 %v79_v12, %v77_v11  ;;  %v81_v16 = vld [vmem:[#allocation5 + $0x40] sm:$0xff] }
  0x3b   :  { %385 = vmatpush1.bf16.msra.mxu0 %v384_v9  ;;  %v83_v17 = vld [vmem:[#allocation5 + $0x50] sm:$0xff]  ;;  %v390_v18 = vpack.c.bf16 %v84_v14, %v82_v13  ;;  %v192_v20 = vld [vmem:[#allocation7 + $0x8] sm:$0xff]  ;;  %v193_v21 = vld [vmem:[#allocation7 + $0x10] sm:$0xff]  ;;  %v91_v49 = vsub.s32 0, %v90_v48  ;;  %v95_v51 = vsub.s32 1, %v90_v48 }
  0x3c   :  { %387 = vmatprep.subr.bf16.mxu0 %v386_v10  ;;  %v191_v19 = vld [vmem:[#allocation7] sm:$0xff]  ;;  %v194_v23 = vld [vmem:[#allocation7 + $0x18] sm:$0xff]  ;;  %v392_v24 = vpack.c.bf16 %v83_v17, %v81_v16  ;;  %v196_v27 = vld [vmem:[#allocation7 + $0x28] sm:$0xff] }
  0x3d   :  { %v395_v22 = vpack.c.bf16 %v192_v20, %v191_v19  ;;  %v398_v25 = vpack.c.bf16 %v194_v23, %v193_v21  ;;  %v195_v26 = vld [vmem:[#allocation7 + $0x20] sm:$0xff]  ;;  %v86_v28 = vld [vmem:[#allocation5 + $0x68] sm:$0xff]  ;;  %v85_v30 = vld [vmem:[#allocation5 + $0x60] sm:$0xff] }
  0x3e   :  { %v401_v29 = vpack.c.bf16 %v196_v27, %v195_v26  ;;  %v197_v31 = vld [vmem:[#allocation7 + $0x30] sm:$0xff]  ;;  %v198_v32 = vld [vmem:[#allocation7 + $0x38] sm:$0xff]  ;;  %v72_v33 = vld [vmem:[#allocation2] sm:$0xff] }
  0x3f   :  { %389 = vmatpush1.bf16.msra.mxu0 %v388_v15  ;;  %396 = vmatpush3.bf16.msra.mxu1 %v395_v22  ;;  %v404_v34 = vpack.c.bf16 %v198_v32, %v197_v31  ;;  %v199_v35 = vld [vmem:[#allocation7 + $0x40] sm:$0xff]  ;;  %v200_v36 = vld [vmem:[#allocation7 + $0x48] sm:$0xff]  ;;  %v201_v38 = vld [vmem:[#allocation7 + $0x50] sm:$0xff] }
  0x40   :  { %391 = vmatprep.subr.bf16.mxu0 %v390_v18  ;;  %397 = vmatprep.subr.bf16.mxu1 %v535_v1  ;;  %v407_v37 = vpack.c.bf16 %v200_v36, %v199_v35  ;;  %v202_v39 = vld [vmem:[#allocation7 + $0x58] sm:$0xff]  ;;  %v203_v41 = vld [vmem:[#allocation7 + $0x60] sm:$0xff]  ;;  %v204_v42 = vld [vmem:[#allocation7 + $0x68] sm:$0xff] }
  0x41   :  { %v410_v40 = vpack.c.bf16 %v202_v39, %v201_v38  ;;  %v413_v43 = vpack.c.bf16 %v204_v42, %v203_v41  ;;  %v205_v44 = vld [vmem:[#allocation7 + $0x70] sm:$0xff]  ;;  %v206_v45 = vld [vmem:[#allocation7 + $0x78] sm:$0xff]  ;;  %v87_v50 = vld [vmem:[%s666_s2] sm:$0x3] }
  0x42   :  { %v416_v46 = vpack.c.bf16 %v206_v45, %v205_v44  ;;  %v92_v52 = vrot.slane %v87_v50, %v91_v49  ;;  %v96_v53 = vrot.slane %v87_v50, %v95_v51  ;;  %v324_v58 = vld [vmem:[%s667_s3] ss:$0 sm:$0xff] }
  0x43   :  { %393 = vmatpush1.bf16.msra.mxu0 %v392_v24  ;;  %399 = vmatpush3.bf16.msra.mxu1 %v398_v25  ;;  %v325_v60 = vld [vmem:[%s668_s4] ss:$0 sm:$0xff]  ;;  %s537_s4 = smov [#allocation8]  }
  0x44   :  { %115 = vmatprep.subr.mxu0 %v86_v28  ;;  %400 = vmatprep.subr.bf16.mxu1 %v535_v1  ;;  %v326_v63 = vld [vmem:[%s670_s6] ss:$0 sm:$0xff]  ;;  %s313_s6 = sshll.u32 %s537_s4, 4  ;;  %s314_s6 = int_to_ptr.vmem [resolvable:$true] %s313_s6 }
  0x45   :  { %v328_v4 = vld [vmem:[%s672_s8] ss:$0 sm:$0xff]  ;;  %s499_s10 = scalar_lea.vmem %s314_s6, 128  ;;  %p504_p11 = scmp.lt.s32.totalorder %s314_s6, %s314_s6 }
  0x46   :  { %p500_p10 = scmp.ne.s32.totalorder %s314_s6, %s499_s10  ;;  %p505_p12 = scmp.lt.s32.totalorder %s499_s10, %s499_s10 }
  0x47   :  { %116 = vmatpush1.msra.mxu0 %v85_v30  ;;  %402 = vmatpush3.bf16.msra.mxu1 %v401_v29 }
  0x48   :  { %323 = vmatmul.mubr.msk.f32.vlgmr.msra.gmra.mrb[0].mxu0 %vm99_vm0, %v72_v33  ;;  %403 = vmatprep.subr.bf16.mxu1 %v535_v1  ;;  %p506_p13 = por %p505_p12, %p504_p11 }
  0x4a   :  { %p507_p0 = pnand %p506_p13, %p500_p10 }
  0x4b   :  { %405 = vmatpush3.bf16.msra.mxu1 %v404_v34 }
  0x4c   :  { %406 = vmatprep.subr.bf16.mxu1 %v535_v1 }
  0x4f   :  { %408 = vmatpush3.bf16.msra.mxu1 %v407_v37 }
  0x50   :  { %409 = vmatprep.subr.bf16.mxu1 %v535_v1 }
  0x53   :  { %411 = vmatpush3.bf16.msra.mxu1 %v410_v40 }
  0x54   :  { %412 = vmatprep.subr.bf16.mxu1 %v535_v1 }
  0x57   :  { %414 = vmatpush3.bf16.msra.mxu1 %v413_v43 }
  0x58   :  { %415 = vmatprep.subr.bf16.mxu1 %v535_v1  ;;  %v327_v1 = vld [vmem:[%s671_s7] ss:$0 sm:$0xff] }
  0x5b   :  { %417 = vmatpush3.bf16.msra.mxu1 %v416_v46 }
 0x11b   :  { %v169_v54 = vpop.f32.mrb[0].mxu0 }
 0x11c   :  { %v170_v55 = vadd.f32 %v169_v54, %v92_v52  ;;  %v171_v56 = vpop.f32.mrb[1].mxu0 }
 0x11d   :  { %v172_v57 = vadd.f32 %v171_v56, %v96_v53 }
 0x11f   :  { %v174_v59 = vmul.f32 %v172_v57, %v170_v55 }
 0x121   :  { %v182_v61 = vmul.f32 %v324_v58, %v174_v59 }
 0x123   :  { %v190_v62 = vadd.f32 %v325_v60, %v182_v61 }
 0x125   :  { %380 = vmatmul.mubr.f32.vlgmr.msra.gmra.mrb[0].mxu1 %v190_v62 }
 0x1f8   :  { %v280_v0 = vpop.f32.mrb[0].mxu1 }
 0x1f9   :  { %v281_v2 = vadd.f32 %v326_v63, %v280_v0  ;;  %v381_v3 = vpop.f32.mrb[1].mxu1 }
 0x1fb   :  { %v291_v5 = vmul.f32 %v327_v1, %v281_v2 }
 0x1fd   :  { %v299_v6 = vadd.f32 %v328_v4, %v291_v5 }
 0x1ff   :  { %v329_v7 = vmul.f32 -1.442695, %v299_v6 }
 0x201   :  { %429 = vpow2.f32 %v329_v7 }
 0x20b   :  { %v430_v8 = vpop.eup %429 }
 0x20c   :  { %v303_v9 = vadd.f32 1.0, %v430_v8 }
 0x20e   :  { %431 = vrcp.f32 %v303_v9 }
 0x218   :  { %v432_v10 = vpop.eup %431 }
 0x219   :  { %306 = vst [vmem:[#allocation8] sm:$0xff] %v432_v10 }
 0x21a   :  { %510 = shalt.err (!%p507_p0)
}
 0x21b   :  { %s511_s14 = scalar_lea.hbm %s673_s9, 128 }
 0x21c   :  { %p512_p1 = scmp.ne.s32.totalorder %s673_s9, %s511_s14  ;;  %p515_p2 = scmp.lt.u32.totalorder %s511_s14, %s673_s9 }
 0x21e   :  { %p517_p3 = pnand %p515_p2, %p512_p1 }
 0x220   :  { %520 = shalt.err (!%p517_p3)
}
 0x221   :  { %316 = dma.vmem_to_hbm [thread:$0]  %s314_s6, 128, %s673_s9, [#allocation4]  }
 0x222   :  { %525 = dma.done.wait [#allocation4], 128  }
 0x223   :  { %526 = vsyncadd [#allocation4], 4294967168 }
 0x224   :  { %320 = vsyncpa [#allocation3], 1 }
 0x225   :  { %321 = vsyncpa [#allocation6], 1 }
 0x226   :  { %322 = vsyncpa [#allocation4], 1 }

</bundles_post_ra>
